<compile_context>
chip_gen: v6e
topology: v6e:2x2x1
jax: 0.10.0
libtpu: 0.0.40
codegen_flags: <defaults>
</compile_context>

<pallas_src>
import functools
import math

import jax
import jax.numpy as jnp
from jax.experimental import pallas as pl
from jax.experimental.pallas import tpu as pltpu


def _attn_gated_kernel(x_ref, w_ab_ref, b_ab_ref, wc_t_ref, bc_ref, a_t_ref, *, D):
    # Cast the token tile to the MXU compute dtype (bf16 path) in VMEM.
    x = x_ref[...].astype(w_ab_ref.dtype)

    # Fused gate projection: one MXU matmul producing (tile, 2D), f32 accum.
    h = jnp.dot(x, w_ab_ref[...], preferred_element_type=jnp.float32)
    h = h + b_ab_ref[...]

    a = jnp.tanh(h[:, :D])            # attention_a (EUP, f32)
    b = jax.nn.sigmoid(h[:, D:])      # attention_b (EUP, f32)
    gated = a * b                     # (tile, D), f32

    # attention_c, computed so the result is (C, tile): tokens land on the
    # lane axis -> lane-dense output stores.  NT dimension numbers: contract
    # dim 1 of Wc^T (C, D) with dim 1 of gated (tile, D).  Tiny matmul, f32.
    A_t = jax.lax.dot_general(
        wc_t_ref[...], gated,
        dimension_numbers=(((1,), (1,)), ((), ())),
        preferred_element_type=jnp.float32)
    A_t = A_t + bc_ref[...]           # (C, 1) bias broadcast over tokens
    a_t_ref[...] = A_t.astype(a_t_ref.dtype)


def _round_up(a, b):
    return (a + b - 1) // b * b


def attn_net_gated(x, wa, ba, wb, bb, wc, bc, *, tile_n=512, use_bf16=True):
    """Pallas TPU forward of Attn_Net_Gated.  Returns (A, x).

    Expected layouts (relative to PyTorch nn.Linear):
      wa, wb : (L, D)  (transposed Linear weights)   ba, bb : (1, D)
      wc     : (D, C)                                 bc     : (1, C)
    """
    N, L = x.shape
    D = wa.shape[1]
    C = wc.shape[1]

    # ---- Host-side fusion / layout prep (tiny, one-time) -------------------
    compute_dtype = jnp.bfloat16 if use_bf16 else x.dtype
    w_ab = jnp.concatenate([wa, wb], axis=1).astype(compute_dtype)   # (L, 2D)
    b_ab = jnp.concatenate([ba, bb], axis=1).astype(jnp.float32)     # (1, 2D)
    wc_t = jnp.transpose(wc).astype(jnp.float32)                     # (C, D)
    bc_t = jnp.reshape(bc, (C, 1)).astype(jnp.float32)               # (C, 1)

    # ---- Tiling over the token axis -----------------------------------------
    tile_n = max(8, _round_up(int(tile_n), 8))
    if N <= tile_n:
        tile = _round_up(max(N, 8), 16)     # one tile covers every row
    else:
        tile = _round_up(tile_n, 128)       # lane-aligned output blocks
    n_pad = _round_up(N, tile)
    x_in = x
    if n_pad != N:
        x_in = jnp.pad(x_in, ((0, n_pad - N), (0, 0)))
    grid = (n_pad // tile,)

    # ---- VMEM budget: double-buffered x/out tiles + resident weights --------
    def nbytes(shape, dt):
        return math.prod(shape) * jnp.dtype(dt).itemsize

    vmem = 2 * (nbytes((tile, L), x.dtype) + nbytes((C, tile), x.dtype))
    vmem += 2 * (nbytes((L, 2 * D), compute_dtype)
                 + nbytes((1, 2 * D), jnp.float32)
                 + nbytes((C, D), jnp.float32)
                 + nbytes((C, 1), jnp.float32))
    # headroom: bf16 copy of x tile + h / a / b / gated temporaries (f32)
    vmem += nbytes((tile, L), compute_dtype) + 6 * nbytes((tile, 2 * D), jnp.float32)
    vmem_limit = int(min(max(vmem, 32 * 1024 * 1024), 64 * 1024 * 1024))

    A_t = pl.pallas_call(
        functools.partial(_attn_gated_kernel, D=D),
        out_shape=jax.ShapeDtypeStruct((C, n_pad), x.dtype),
        grid_spec=pltpu.PrefetchScalarGridSpec(
            num_scalar_prefetch=0,
            grid=grid,
            in_specs=[
                pl.BlockSpec((tile, L), lambda i: (i, 0)),        # x tile
                pl.BlockSpec((L, 2 * D), lambda i: (0, 0)),       # fused Wa||Wb
                pl.BlockSpec((1, 2 * D), lambda i: (0, 0)),       # fused ba||bb
                pl.BlockSpec((C, D), lambda i: (0, 0)),           # Wc^T
                pl.BlockSpec((C, 1), lambda i: (0, 0)),           # bc
            ],
            out_specs=pl.BlockSpec((C, tile), lambda i: (0, i)),  # lane-dense
        ),
        compiler_params=pltpu.CompilerParams(
            dimension_semantics=("parallel",),
            vmem_limit_bytes=vmem_limit),
    )(x_in, w_ab, b_ab, wc_t, bc_t)

    A = jnp.transpose(A_t)[:N]          # (N, C)  — tiny transpose in XLA
    # Module returns (A, x); x passes through untouched.
    # TODO(synk): nn.Dropout branch (dropout > 0) not implemented; module
    # default dropout=-1 makes it a no-op.
    return A, x


def init_params(key, L, D, n_classes, dtype=jnp.float32):
    """Deterministic PyTorch-Linear-style init (uniform +/- 1/sqrt(fan_in))."""
    ks = jax.random.split(key, 6)
    bound_a = 1.0 / jnp.sqrt(L)
    bound_c = 1.0 / jnp.sqrt(D)
    wa = jax.random.uniform(ks[0], (L, D), dtype, -bound_a, bound_a)
    ba = jax.random.uniform(ks[1], (1, D), dtype, -bound_a, bound_a)
    wb = jax.random.uniform(ks[2], (L, D), dtype, -bound_a, bound_a)
    bb = jax.random.uniform(ks[3], (1, D), dtype, -bound_a, bound_a)
    wc = jax.random.uniform(ks[4], (D, n_classes), dtype, -bound_c, bound_c)
    bc = jax.random.uniform(ks[5], (1, n_classes), dtype, -bound_c, bound_c)
    return wa, ba, wb, bb, wc, bc


def _reference(x, wa, ba, wb, bb, wc, bc):
    a = jnp.tanh(x @ wa + ba)
    b = jax.nn.sigmoid(x @ wb + bb)
    return (a * b) @ wc + bc


if __name__ == "__main__":
    key = jax.random.PRNGKey(0)
    k1, k2, k3, k4 = jax.random.split(key, 4)

    # ---- Check 1: f32 path, single tile, C=1 --------------------------------
    N, L, D, C = 16, 128, 64, 1
    x = jax.random.normal(k1, (N, L), dtype=jnp.float32)
    params = init_params(k2, L, D, C)

    A, x_out = attn_net_gated(x, *params, tile_n=512, use_bf16=False)
    A = jax.block_until_ready(A)
    x_out = jax.block_until_ready(x_out)

    A_ref = _reference(x, *params)
    assert A.shape == (N, C)
    assert x_out.shape == (N, L)
    assert jnp.allclose(A, A_ref, atol=1e-5, rtol=1e-5)
    assert jnp.array_equal(x_out, x)

    # ---- Check 2: bf16 path, ragged N, multi-step grid, C=2 -----------------
    N2, L2, D2, C2 = 300, 128, 64, 2
    x2 = jax.random.normal(k3, (N2, L2), dtype=jnp.float32)
    params2 = init_params(k4, L2, D2, C2)

    A2, x2_out = attn_net_gated(x2, *params2, tile_n=128, use_bf16=True)
    A2 = jax.block_until_ready(A2)

    # Reference with the same bf16 rounding applied to x and the gate weights.
    wa2, ba2, wb2, bb2, wc2, bc2 = params2
    r = lambda t: t.astype(jnp.bfloat16).astype(jnp.float32)
    A2_ref = _reference(r(x2), r(wa2), ba2, r(wb2), bb2, wc2, bc2)
    assert A2.shape == (N2, C2)
    assert x2_out.shape == (N2, L2)
    assert jnp.allclose(A2, A2_ref, atol=2e-2, rtol=2e-2)
    assert jnp.array_equal(x2_out, x2)

    print("KERNEL_OK")
</pallas_src>

<mosaic_0001>
module attributes {stable_mosaic.version = 11 : i64} {
  func.func @_attn_gated_kernel(%arg0: i32, %arg1: memref<16x128xf32, #tpu.memory_space<vmem>>, %arg2: memref<128x128xf32, #tpu.memory_space<vmem>>, %arg3: memref<1x128xf32, #tpu.memory_space<vmem>>, %arg4: memref<1x64xf32, #tpu.memory_space<vmem>>, %arg5: memref<1x1xf32, #tpu.memory_space<vmem>>, %arg6: memref<1x16xf32, #tpu.memory_space<vmem>>) attributes {dimension_semantics = [#tpu.dimension_semantics<parallel>], iteration_bounds = array<i64: 1>, scalar_prefetch = 0 : i64, scratch_operands = 0 : i64, tpu.core_type = #tpu.core_type<tc>, window_params = [{transform_indices = @transform_0, window_bounds = array<i64: 16, 128>}, {pipeline_mode = #tpu.pipeline_mode<synchronous>, transform_indices = @transform_1, window_bounds = array<i64: 128, 128>}, {pipeline_mode = #tpu.pipeline_mode<synchronous>, transform_indices = @transform_2, window_bounds = array<i64: 1, 128>}, {pipeline_mode = #tpu.pipeline_mode<synchronous>, transform_indices = @transform_3, window_bounds = array<i64: 1, 64>}, {pipeline_mode = #tpu.pipeline_mode<synchronous>, transform_indices = @transform_4, window_bounds = array<i64: 1, 1>}, {transform_indices = @transform_5, window_bounds = array<i64: 1, 16>}]} {
    %c0 = arith.constant 0 : index
    %c0_0 = arith.constant 0 : index
    %0 = vector.load %arg1[%c0, %c0_0] : memref<16x128xf32, #tpu.memory_space<vmem>>, vector<16x128xf32>
    %c0_1 = arith.constant 0 : index
    %c0_2 = arith.constant 0 : index
    %1 = vector.load %arg2[%c0_1, %c0_2] : memref<128x128xf32, #tpu.memory_space<vmem>>, vector<128x128xf32>
    %cst = arith.constant dense<0.000000e+00> : vector<16x128xf32>
    %2 = tpu.matmul %0, %1, %cst {dimension_numbers = #tpu.dot_dimension_numbers<[1], [0], [0], [1], [0, 0, 1, 1], [], []>} : vector<16x128xf32>, vector<128x128xf32>, vector<16x128xf32> -> vector<16x128xf32>
    %c0_3 = arith.constant 0 : index
    %c0_4 = arith.constant 0 : index
    %3 = vector.load %arg3[%c0_3, %c0_4] : memref<1x128xf32, #tpu.memory_space<vmem>>, vector<1x128xf32>
    %4 = vector.broadcast %3 : vector<1x128xf32> to vector<16x128xf32>
    %5 = arith.addf %2, %4 : vector<16x128xf32>
    %6 = vector.extract_strided_slice %5 {offsets = [0, 0], sizes = [16, 64], strides = [1, 1]} : vector<16x128xf32> to vector<16x64xf32>
    %7 = math.tanh %6 : vector<16x64xf32>
    %8 = vector.extract_strided_slice %5 {offsets = [0, 64], sizes = [16, 64], strides = [1, 1]} : vector<16x128xf32> to vector<16x64xf32>
    %9 = arith.negf %8 : vector<16x64xf32>
    %10 = math.exp %9 : vector<16x64xf32>
    %cst_5 = arith.constant 1.000000e+00 : f32
    %11 = vector.broadcast %cst_5 : f32 to vector<16x64xf32>
    %12 = arith.addf %11, %10 : vector<16x64xf32>
    %13 = arith.divf %11, %12 : vector<16x64xf32>
    %14 = arith.mulf %7, %13 : vector<16x64xf32>
    %c0_6 = arith.constant 0 : index
    %c0_7 = arith.constant 0 : index
    %15 = vector.load %arg4[%c0_6, %c0_7] : memref<1x64xf32, #tpu.memory_space<vmem>>, vector<1x64xf32>
    %cst_8 = arith.constant dense<0.000000e+00> : vector<1x16xf32>
    %16 = tpu.matmul %15, %14, %cst_8 {dimension_numbers = #tpu.dot_dimension_numbers<[1], [1], [0], [0], [0, 0, 1, 0], [], []>} : vector<1x64xf32>, vector<16x64xf32>, vector<1x16xf32> -> vector<1x16xf32>
    %c0_9 = arith.constant 0 : index
    %c0_10 = arith.constant 0 : index
    %17 = vector.load %arg5[%c0_9, %c0_10] : memref<1x1xf32, #tpu.memory_space<vmem>>, vector<1x1xf32>
    %18 = vector.broadcast %17 : vector<1x1xf32> to vector<1x16xf32>
    %19 = arith.addf %16, %18 : vector<1x16xf32>
    %c0_11 = arith.constant 0 : index
    %c0_12 = arith.constant 0 : index
    %20 = vector.load %arg6[%c0_11, %c0_12] : memref<1x16xf32, #tpu.memory_space<vmem>>, vector<1x16xf32>
    tpu.vector_store %arg6[%c0_11, %c0_12], %19 {strides = array<i32>} : memref<1x16xf32, #tpu.memory_space<vmem>>, vector<1x16xf32>,
    return
  }
  func.func @transform_0(%arg0: i32) -> (i32, i32) {
    %c0_i32 = arith.constant 0 : i32
    %c0_i32_0 = arith.constant 0 : i32
    return %arg0, %c0_i32 : i32, i32
  }
  func.func @transform_1(%arg0: i32) -> (i32, i32) {
    %c0_i32 = arith.constant 0 : i32
    %c0_i32_0 = arith.constant 0 : i32
    %c0_i32_1 = arith.constant 0 : i32
    return %c0_i32, %c0_i32_0 : i32, i32
  }
  func.func @transform_2(%arg0: i32) -> (i32, i32) {
    %c0_i32 = arith.constant 0 : i32
    %c0_i32_0 = arith.constant 0 : i32
    %c0_i32_1 = arith.constant 0 : i32
    return %c0_i32, %c0_i32_0 : i32, i32
  }
  func.func @transform_3(%arg0: i32) -> (i32, i32) {
    %c0_i32 = arith.constant 0 : i32
    %c0_i32_0 = arith.constant 0 : i32
    %c0_i32_1 = arith.constant 0 : i32
    return %c0_i32, %c0_i32_0 : i32, i32
  }
  func.func @transform_4(%arg0: i32) -> (i32, i32) {
    %c0_i32 = arith.constant 0 : i32
    %c0_i32_0 = arith.constant 0 : i32
    %c0_i32_1 = arith.constant 0 : i32
    return %c0_i32, %c0_i32_0 : i32, i32
  }
  func.func @transform_5(%arg0: i32) -> (i32, i32) {
    %c0_i32 = arith.constant 0 : i32
    %c0_i32_0 = arith.constant 0 : i32
    return %c0_i32, %arg0 : i32, i32
  }
}

</mosaic_0001>

<bundles_post_ra>
// kernel: tpu_custom_call.1
= control target key start
LH: loop header
LB: loop body
LE: loop exit
PB: predicated region body
PF: predicated region fallthrough
CT: control target
= control target key end

     0   :  { %s499_s0 = inlined_call_operand.hbm [shape: f32[16,128], index: 0, kind: input, shape index: {}]   ;;  %s500_s1 = inlined_call_operand.hbm [shape: f32[128,128], index: 1, kind: input, shape index: {}]   ;;  %s501_s2 = inlined_call_operand.vmem [shape: f32[1,128], index: 2, kind: input, shape index: {}]   ;;  %s502_s3 = inlined_call_operand.vmem [shape: f32[1,64], index: 3, kind: input, shape index: {}]   ;;  %s503_s4 = inlined_call_operand.<no memory space> [shape: f32[1,1], index: 4, kind: input, shape index: {}]   ;;  %s504_s5 = inlined_call_operand.hbm [shape: f32[1,16], index: 5, kind: output, shape index: {}]  }
   0x1   :  { %v10_v0 = vstv %s503_s4 }
   0x2   :  { %11 = vst [vmem:[#allocation2] sm:$0x1] %v10_v0 }
   0x3   :  { %12 = vsyncpa [#allocation4], 0 }
   0x4   :  { %13 = vsyncpa [#allocation7], 0 }
   0x5   :  { %14 = vsyncpa [#allocation5], 0  ;;  %s442_s20 = smov [#allocation3]  }
   0x6   :  { %s20_s21 = sshll.u32 %s442_s20, 4  ;;  %s21_s21 = int_to_ptr.vmem [resolvable:$true] %s20_s21 }
   0x7   :  { %s384_s22 = scalar_lea.vmem %s21_s21, 256  ;;  %p389_p1 = scmp.lt.s32.totalorder %s21_s21, %s21_s21 }
   0x8   :  { %p385_p0 = scmp.ne.s32.totalorder %s21_s21, %s384_s22  ;;  %p390_p2 = scmp.lt.s32.totalorder %s384_s22, %s384_s22 }
   0xa   :  { %p391_p3 = por %p390_p2, %p389_p1 }
   0xc   :  { %p392_p4 = pnand %p391_p3, %p385_p0 }
   0xe   :  { %395 = shalt.err (!%p392_p4)
}
   0xf   :  { %s443_s23 = smov 128   ;;  %s444_s24 = smov 8  }
  0x10   :  { %26 = dma.hbm_to_vmem [thread:$0]  %s499_s0, 256, %s21_s21, [#allocation4], %s443_s23, %s443_s23, %s444_s24  }
  0x11   :  { %s445_s4 = smov [#allocation6]  }
  0x12   :  { %s32_s27 = sshll.u32 %s445_s4, 4  ;;  %s33_s27 = int_to_ptr.vmem [resolvable:$true] %s32_s27 }
  0x13   :  { %s404_s28 = scalar_lea.vmem %s33_s27, 2048  ;;  %p409_p6 = scmp.lt.s32.totalorder %s33_s27, %s33_s27 }
  0x14   :  { %p405_p5 = scmp.ne.s32.totalorder %s33_s27, %s404_s28  ;;  %p410_p7 = scmp.lt.s32.totalorder %s404_s28, %s404_s28 }
  0x16   :  { %p411_p8 = por %p410_p7, %p409_p6 }
  0x18   :  { %p412_p9 = pnand %p411_p8, %p405_p5 }
  0x1a   :  { %415 = shalt.err (!%p412_p9)
}
  0x1b   :  { %38 = dma.hbm_to_vmem [thread:$0]  %s500_s1, 2048, %s33_s27, [#allocation7], %s443_s23, %s443_s23, %s444_s24  }
  0x1c   :  { %436 = dma.done.wait [#allocation4], 256  }
  0x1d   :  { %437 = vsyncadd [#allocation4], 4294967040 }
  0x1e   :  { %438 = dma.done.wait [#allocation7], 2048  }
  0x1f   :  { %439 = vsyncadd [#allocation7], 4294965248  ;;  %v68_v1 = vld [vmem:[#allocation6 + $0x78] sm:$0xff]  ;;  %v67_v2 = vld [vmem:[#allocation6 + $0x70] sm:$0xff]  ;;  %v446_v30 = vmov 0.0   ;;  %vm447_vm0 = vmmov 0   ;;  %v182_v42 = vlaneseq }
  0x20   :  { %311 = vmatprep.subr.mxu0 %v68_v1  ;;  %v66_v3 = vld [vmem:[#allocation6 + $0x68] sm:$0xff]  ;;  %v65_v4 = vld [vmem:[#allocation6 + $0x60] sm:$0xff]  ;;  %v51_v5 = vld [vmem:[#allocation3] sm:$0xff]  ;;  %346 = vmatprep.subr.mxu1 %v446_v30  ;;  %v448_v32 = vmov 0   ;;  %vm186_vm1 = vcmask 523264   ;;  %s450_s8 = smov [#allocation8]  }
  0x21   :  { %312 = vmatpush3.msra.mxu0 %v68_v1  ;;  %v64_v6 = vld [vmem:[#allocation6 + $0x58] sm:$0xff]  ;;  %343 = vmatprep.mubr.f32.mxu0 %v51_v5  ;;  %v63_v7 = vld [vmem:[#allocation6 + $0x50] sm:$0xff]  ;;  %v62_v8 = vld [vmem:[#allocation6 + $0x48] sm:$0xff]  ;;  %v183_v43 = vshrl.u32 %v182_v42, 7  ;;  %s274_s9 = sshll.u32 %s450_s8, 4  ;;  %vm266_vm2 = vcmask 122880   ;;  %s275_s9 = int_to_ptr.vmem [resolvable:$true] %s274_s9 }
  0x22   :  { %313 = vmatprep.subr.mxu0 %v67_v2  ;;  %v61_v9 = vld [vmem:[#allocation6 + $0x40] sm:$0xff]  ;;  %v60_v10 = vld [vmem:[#allocation6 + $0x38] sm:$0xff]  ;;  %v59_v11 = vld [vmem:[#allocation6 + $0x30] sm:$0xff]  ;;  %350 = vmatprep.mubr.msk.f32.mxu1 %vm447_vm0, %v446_v30  ;;  %s416_s10 = scalar_lea.vmem %s275_s9, 16  ;;  %s420_s11 = scalar_lea.vmem %s275_s9, 32 }
  0x23   :  { %314 = vmatpush3.msra.mxu0 %v67_v2  ;;  %v58_v12 = vld [vmem:[#allocation6 + $0x28] sm:$0xff]  ;;  %v57_v13 = vld [vmem:[#allocation6 + $0x20] sm:$0xff]  ;;  %v56_v14 = vld [vmem:[#allocation6 + $0x18] sm:$0xff]  ;;  %362 = vset.pattern.permute.xlu1 %v448_v32  ;;  %v184_v44 = vsub.s32 0, %v183_v43  ;;  %p417_p10 = scmp.ne.s32.totalorder %s275_s9, %s416_s10  ;;  %p421_p11 = scmp.lt.s32.totalorder %s275_s9, %s275_s9 }
  0x24   :  { %315 = vmatprep.subr.mxu0 %v66_v3  ;;  %v55_v15 = vld [vmem:[#allocation6 + $0x10] sm:$0xff]  ;;  %v54_v16 = vld [vmem:[#allocation6 + $0x8] sm:$0xff]  ;;  %v53_v17 = vld [vmem:[#allocation6] sm:$0xff]  ;;  %363 = vset.pattern.permute.xlu0 %v448_v32  ;;  %p422_p12 = scmp.lt.s32.totalorder %s420_s11, %s416_s10 }
  0x25   :  { %316 = vmatpush3.msra.mxu0 %v66_v3  ;;  %v52_v18 = vld [vmem:[#allocation3 + $0x8] sm:$0xff]  ;;  %v284_v19 = vld [vmem:[%s501_s2] ss:$0 sm:$0xff]  ;;  %s449_s2 = smov 64  }
  0x26   :  { %317 = vmatprep.subr.mxu0 %v65_v4  ;;  %v176_v31 = vld [vmem:[#allocation2] sm:$0x1]  ;;  %p423_p13 = por %p422_p12, %p421_p11 }
  0x27   :  { %318 = vmatpush3.msra.mxu0 %v65_v4  ;;  %179 = vperm.xlu1 %362, %v176_v31   ;;  %v175_v41 = vld [vmem:[%s502_s3] sm:$0x1] }
  0x28   :  { %319 = vmatprep.subr.mxu0 %v64_v6  ;;  %p424_p0 = pnand %p423_p13, %p417_p10 }
  0x29   :  { %320 = vmatpush3.msra.mxu0 %v64_v6 }
  0x2a   :  { %321 = vmatprep.subr.mxu0 %v63_v7 }
  0x2b   :  { %322 = vmatpush3.msra.mxu0 %v63_v7 }
  0x2c   :  { %323 = vmatprep.subr.mxu0 %v62_v8 }
  0x2d   :  { %324 = vmatpush3.msra.mxu0 %v62_v8 }
  0x2e   :  { %325 = vmatprep.subr.mxu0 %v61_v9 }
  0x2f   :  { %326 = vmatpush3.msra.mxu0 %v61_v9 }
  0x30   :  { %327 = vmatprep.subr.mxu0 %v60_v10 }
  0x31   :  { %328 = vmatpush3.msra.mxu0 %v60_v10 }
  0x32   :  { %329 = vmatprep.subr.mxu0 %v59_v11 }
  0x33   :  { %330 = vmatpush3.msra.mxu0 %v59_v11 }
  0x34   :  { %331 = vmatprep.subr.mxu0 %v58_v12 }
  0x35   :  { %332 = vmatpush3.msra.mxu0 %v58_v12 }
  0x36   :  { %333 = vmatprep.subr.mxu0 %v57_v13 }
  0x37   :  { %334 = vmatpush3.msra.mxu0 %v57_v13 }
  0x38   :  { %335 = vmatprep.subr.mxu0 %v56_v14 }
  0x39   :  { %336 = vmatpush3.msra.mxu0 %v56_v14 }
  0x3a   :  { %337 = vmatprep.subr.mxu0 %v55_v15 }
  0x3b   :  { %338 = vmatpush3.msra.mxu0 %v55_v15 }
  0x3c   :  { %339 = vmatprep.subr.mxu0 %v54_v16 }
  0x3d   :  { %340 = vmatpush3.msra.mxu0 %v54_v16 }
  0x3e   :  { %341 = vmatprep.subr.mxu0 %v53_v17 }
  0x3f   :  { %342 = vmatpush3.msra.mxu0 %v53_v17 }
  0x40   :  { %344 = vmatmul.mubr.f32.vlgmr.msra.gmra.mxu0 %v52_v18 }
  0xa2   :  { %v180_v45 = vpop.permute.xlu1 %179 }
  0xa3   :  { %v185_v46 = vrot.slane %v180_v45, %v184_v44 }
 0x100   :  { %v345_v20 = vpop.f32.mrf.mxu0 }
 0x101   :  { %v148_v21 = vadd.f32 %v345_v20, %v284_v19 }
 0x102   :  { %v142_v22 = vpop.f32.mrf.mxu0 }
 0x103   :  { %v286_v23 = vmul.f32 -1.442695, %v148_v21  ;;  %v143_v24 = vadd.f32 %v284_v19, %v142_v22 }
 0x105   :  { %364 = vpow2.f32 %v286_v23  ;;  %v285_v25 = vmul.f32 -1.442695, %v143_v24 }
 0x107   :  { %366 = vpow2.f32 %v285_v25 }
 0x112   :  { %v365_v26 = vpop.eup %364 }
 0x113   :  { %v160_v27 = vadd.f32 1.0, %v365_v26 }
 0x114   :  { %v367_v28 = vpop.eup %366 }
 0x115   :  { %368 = vrcp.f32 %v160_v27  ;;  %v159_v29 = vadd.f32 1.0, %v367_v28 }
 0x117   :  { %370 = vrcp.f32 %v159_v29 }
 0x118   :  { %372 = vtanh.f32 %v148_v21 }
 0x119   :  { %374 = vtanh.f32 %v143_v24 }
 0x122   :  { %v369_v33 = vpop.eup %368 }
 0x123   :  { %169 = vrot.lane.b32.xlu0 %v369_v33, %s449_s2 }
 0x124   :  { %v371_v34 = vpop.eup %370 }
 0x125   :  { %v373_v35 = vpop.eup %372 }
 0x126   :  { %v375_v38 = vpop.eup %374 }
 0x127   :  { %167 = vrot.lane.b32.xlu0 %v371_v34, %s449_s2 }
 0x195   :  { %v170_v36 = vpop.permute.xlu0 %169 }
 0x196   :  { %v174_v37 = vmul.f32 %v373_v35, %v170_v36 }
 0x198   :  { %347 = vmatpush3.xpose.msk.msra.mxu1 %vm186_vm1, %v174_v37 }
 0x199   :  { %v168_v39 = vpop.permute.xlu0 %167  ;;  %348 = vmatprep.subr.mxu1 %v446_v30 }
 0x19a   :  { %v173_v40 = vmul.f32 %v375_v38, %v168_v39 }
 0x19c   :  { %349 = vmatpush3.xpose.msk.msra.mxu1 %vm186_vm1, %v173_v40 }
 0x19f   :  { %351 = vmatmul.mubr.msk.f32.vlgmr.msra.gmra.mxu1 %vm186_vm1, %v175_v41 }
 0x25f   :  { %v262_v47 = vpop.f32.mrf.mxu1 }
 0x260   :  { %v263_v48 = vadd.f32 %v262_v47, %v185_v46 }
 0x261   :  { %v352_v49 = vpop.f32.mrf.mxu1 }
 0x262   :  { %267 = vst.msk [vmem:[#allocation8] sm:$0x1] %vm266_vm2, %v263_v48 }
 0x263   :  { %427 = shalt.err (!%p424_p0)
}
 0x264   :  { %277 = dma.vmem_to_hbm [thread:$0]  %s275_s9, 16, %s504_s5, [#allocation5]  }
 0x265   :  { %440 = dma.done.wait [#allocation5], 16  }
 0x266   :  { %441 = vsyncadd [#allocation5], 4294967280 }
 0x267   :  { %281 = vsyncpa [#allocation4], 1 }
 0x268   :  { %282 = vsyncpa [#allocation7], 1 }
 0x269   :  { %283 = vsyncpa [#allocation5], 1 }

</bundles_post_ra>
